<compile_context>
chip_gen: v7x
topology: tpu7x:2x2x1
jax: 0.10.0
libtpu: 0.0.40
codegen_flags: <defaults>
</compile_context>

<pallas_src>
import functools

import jax
import jax.numpy as jnp
from jax.experimental import pallas as pl
from jax.experimental.pallas import tpu as pltpu


def _fused_textcnn_kernel(x_ref, w_ref, b_ref, o_ref, *,
                          n_grams, offsets, filters, out_cols):
    """One block of TB batch elements per grid step.

    x_ref: (TB, S, D)      bf16 input rows
    w_ref: (D, Cw)         bf16, Cw = sum_g g*F (all grams stacked column-wise)
    b_ref: (1, nGrams*F)   f32 biases
    o_ref: (TB, out_cols)  f32 output, out_cols = nGrams*F padded up to 128 lanes
    """
    tb, s, d = x_ref.shape
    cw = w_ref.shape[1]

    # Single wide MXU matmul:
    #   y[b*S + t, off_g + i*F + f] = x[b, t, :] . W_g[i, :, f]
    x = x_ref[...].reshape(tb * s, d)
    y = jnp.dot(x, w_ref[...], preferred_element_type=jnp.float32)
    y = y.reshape(tb, s, cw)
    bias = b_ref[...]                                   # (1, nGrams*F) f32

    parts = []
    for gi, g in enumerate(n_grams):
        off = offsets[gi]
        l_out = s - g + 1
        # Conv2d with a full-width (g, D) kernel == sum of sequence-shifted
        # column slices of the single matmul above.
        acc = y[:, 0:l_out, off:off + filters]
        for i in range(1, g):                           # g is small & static
            acc = acc + y[:, i:i + l_out,
                          off + i * filters: off + (i + 1) * filters]
        acc = acc + bias[:, gi * filters:(gi + 1) * filters][:, None, :]
        acc = jnp.maximum(acc, 0.0)                     # ReLU
        parts.append(jnp.max(acc, axis=1))              # max over length -> (TB, F)

    feat = len(n_grams) * filters
    if out_cols > feat:                                 # keep the store lane-dense
        parts.append(jnp.zeros((tb, out_cols - feat), jnp.float32))
    o_ref[...] = jnp.concatenate(parts, axis=1)


def text_encoder_forward(x, w_all, b_all, n_grams, filters, *, tb=None):
    """x: (B, S, D) f32; w_all: (D, sum_g g*F) f32; b_all: (1, nGrams*F) f32.

    Returns (B, nGrams*F) f32.
    """
    B, S, D = x.shape
    n_grams = tuple(int(g) for g in n_grams)
    assert S >= max(n_grams), "sequence shorter than largest n-gram"
    feat = len(n_grams) * filters
    cw = w_all.shape[1]
    out_cols = ((feat + 127) // 128) * 128              # lane-dense output block

    if tb is None:
        # M = tb*S rows fed to the MXU per step (128/256 at S=16).
        tb = min(16, ((B + 7) // 8) * 8)
    b_pad = ((B + tb - 1) // tb) * tb
    if b_pad != B:
        x = jnp.concatenate(
            [x, jnp.zeros((b_pad - B, S, D), x.dtype)], axis=0)

    # bf16 matmul operands (f32 accumulation inside the kernel): halves x DMA
    # bytes and hits full MXU rate on v6e/v7x.
    x_bf = x.astype(jnp.bfloat16)
    w_bf = w_all.astype(jnp.bfloat16)

    offsets, off = [], 0
    for g in n_grams:
        offsets.append(off)
        off += g * filters
    offsets = tuple(offsets)

    kernel = functools.partial(
        _fused_textcnn_kernel, n_grams=n_grams, offsets=offsets,
        filters=filters, out_cols=out_cols)

    flops = 2 * b_pad * S * D * cw
    bytes_accessed = (b_pad * S * D * 2 + D * cw * 2
                      + feat * 4 + b_pad * out_cols * 4)

    out = pl.pallas_call(
        kernel,
        out_shape=jax.ShapeDtypeStruct((b_pad, out_cols), jnp.float32),
        grid_spec=pltpu.PrefetchScalarGridSpec(
            num_scalar_prefetch=0,
            grid=(b_pad // tb,),
            in_specs=[
                pl.BlockSpec((tb, S, D), lambda i: (i, 0, 0)),   # x tile
                pl.BlockSpec((D, cw), lambda i: (0, 0)),         # resident W
                pl.BlockSpec((1, feat), lambda i: (0, 0)),       # resident bias
            ],
            out_specs=pl.BlockSpec((tb, out_cols), lambda i: (i, 0)),
        ),
        compiler_params=pltpu.CompilerParams(
            dimension_semantics=("parallel",)),
        cost_estimate=pl.CostEstimate(
            flops=flops, transcendentals=0, bytes_accessed=bytes_accessed),
    )(x_bf, w_bf, b_all)

    return out[:B, :feat]


class TextEncoderPallas:
    """Deterministically-initialized equivalent of the PyTorch TextEncoder."""

    def __init__(self, vec_size, n_grams, filters, key):
        self.data_size = vec_size
        self.n_grams = [int(g) for g in n_grams]
        self.filters = filters
        self.feature_len = len(self.n_grams) * filters

        self.per_gram = []                 # [(w: (g, D, F) f32, b: (F,) f32)]
        w_cols, biases = [], []
        for gram in self.n_grams:
            key, kw, kb = jax.random.split(key, 3)
            fan_in = 1 * gram * vec_size
            bound = 1.0 / (fan_in ** 0.5)
            # PyTorch Conv2d(1, F, (g, D)) weight shape: (F, 1, g, D)
            w = jax.random.uniform(
                kw, (filters, 1, gram, vec_size), jnp.float32, -bound, bound)
            b = jax.random.uniform(kb, (filters,), jnp.float32, -bound, bound)
            self.per_gram.append((jnp.transpose(w[:, 0], (1, 2, 0)), b))
            # Fused column layout per gram: [pos0 | pos1 | ...], each (D, F).
            w_cols.append(jnp.transpose(w[:, 0], (2, 1, 0)).reshape(
                vec_size, gram * filters))
            biases.append(b)
        self.w_all = jnp.concatenate(w_cols, axis=1)         # (D, sum_g g*F)
        self.b_all = jnp.concatenate(biases).reshape(1, self.feature_len)

    def __call__(self, x):
        # x: (B, S*D) or (B, S, D)  ->  (B, nGrams*F)
        B = x.shape[0]
        x = x.reshape(B, -1, self.data_size).astype(jnp.float32)
        return text_encoder_forward(
            x, self.w_all, self.b_all, self.n_grams, self.filters)


def _reference(x, encoder):
    """Plain-JAX reference (same bf16-rounded operands, f32 math)."""
    B = x.shape[0]
    x = x.reshape(B, -1, encoder.data_size).astype(jnp.float32)
    S = x.shape[1]
    xr = x.astype(jnp.bfloat16).astype(jnp.float32)
    outs = []
    for gram, (w, b) in zip(encoder.n_grams, encoder.per_gram):
        wr = w.astype(jnp.bfloat16).astype(jnp.float32)
        L = S - gram + 1
        acc = jnp.zeros((B, L, encoder.filters), jnp.float32)
        for i in range(gram):
            acc = acc + jnp.einsum('bld,df->blf', xr[:, i:i + L, :], wr[i])
        y = jnp.maximum(acc + b[None, None, :], 0.0)
        outs.append(jnp.max(y, axis=1))
    return jnp.concatenate(outs, axis=1)


if __name__ == "__main__":
    key = jax.random.PRNGKey(0)
    k_in, k_params = jax.random.split(key)

    # Small shapes implied by the forward: batch=2, seq=16, vec_size=32,
    # n_grams = 2,3,4, filters=32.
    B, S, D = 2, 16, 32
    n_grams = (2, 3, 4)
    filters = 32

    x = jax.random.normal(k_in, (B, S, D), jnp.float32)

    encoder = TextEncoderPallas(D, n_grams, filters, k_params)
    out = jax.block_until_ready(encoder(x))

    assert out.shape == (B, encoder.feature_len), out.shape

    ref = _reference(x, encoder)
    err = float(jnp.max(jnp.abs(out - ref)))
    assert jnp.allclose(out, ref, atol=2e-3, rtol=2e-3), err

    print("KERNEL_OK")
</pallas_src>

<mosaic_0001>
module attributes {stable_mosaic.version = 11 : i64} {
  func.func @_fused_textcnn_kernel(%arg0: i32, %arg1: memref<8x16x32xbf16, #tpu.memory_space<vmem>>, %arg2: memref<32x288xbf16, #tpu.memory_space<vmem>>, %arg3: memref<1x96xf32, #tpu.memory_space<vmem>>, %arg4: memref<8x128xf32, #tpu.memory_space<vmem>>) attributes {dimension_semantics = [#tpu.dimension_semantics<parallel>], iteration_bounds = array<i64: 1>, scalar_prefetch = 0 : i64, scratch_operands = 0 : i64, tpu.core_type = #tpu.core_type<tc>, window_params = [{transform_indices = @transform_0, window_bounds = array<i64: 8, 16, 32>}, {pipeline_mode = #tpu.pipeline_mode<synchronous>, transform_indices = @transform_1, window_bounds = array<i64: 32, 288>}, {pipeline_mode = #tpu.pipeline_mode<synchronous>, transform_indices = @transform_2, window_bounds = array<i64: 1, 96>}, {transform_indices = @transform_3, window_bounds = array<i64: 8, 128>}]} {
    %c0 = arith.constant 0 : index
    %c0_0 = arith.constant 0 : index
    %c0_1 = arith.constant 0 : index
    %0 = vector.load %arg1[%c0, %c0_0, %c0_1] : memref<8x16x32xbf16, #tpu.memory_space<vmem>>, vector<8x16x32xbf16>
    %1 = vector.shape_cast %0 : vector<8x16x32xbf16> to vector<128x32xbf16>
    %c0_2 = arith.constant 0 : index
    %c0_3 = arith.constant 0 : index
    %2 = vector.load %arg2[%c0_2, %c0_3] : memref<32x288xbf16, #tpu.memory_space<vmem>>, vector<32x288xbf16>
    %cst = arith.constant dense<0.000000e+00> : vector<128x288xf32>
    %3 = tpu.matmul %1, %2, %cst {dimension_numbers = #tpu.dot_dimension_numbers<[1], [0], [0], [1], [0, 0, 1, 1], [], []>} : vector<128x32xbf16>, vector<32x288xbf16>, vector<128x288xf32> -> vector<128x288xf32>
    %4 = vector.shape_cast %3 : vector<128x288xf32> to vector<8x16x288xf32>
    %c0_4 = arith.constant 0 : index
    %c0_5 = arith.constant 0 : index
    %5 = vector.load %arg3[%c0_4, %c0_5] : memref<1x96xf32, #tpu.memory_space<vmem>>, vector<1x96xf32>
    %6 = vector.extract_strided_slice %4 {offsets = [0, 0, 0], sizes = [8, 15, 32], strides = [1, 1, 1]} : vector<8x16x288xf32> to vector<8x15x32xf32>
    %7 = vector.extract_strided_slice %4 {offsets = [0, 1, 32], sizes = [8, 15, 32], strides = [1, 1, 1]} : vector<8x16x288xf32> to vector<8x15x32xf32>
    %8 = arith.addf %6, %7 : vector<8x15x32xf32>
    %9 = vector.extract_strided_slice %5 {offsets = [0, 0], sizes = [1, 32], strides = [1, 1]} : vector<1x96xf32> to vector<1x32xf32>
    %10 = vector.shape_cast %9 : vector<1x32xf32> to vector<1x1x32xf32>
    %11 = vector.broadcast %10 : vector<1x1x32xf32> to vector<8x15x32xf32>
    %12 = arith.addf %8, %11 : vector<8x15x32xf32>
    %cst_6 = arith.constant 0.000000e+00 : f32
    %13 = vector.broadcast %cst_6 : f32 to vector<8x15x32xf32>
    %14 = arith.maximumf %12, %13 : vector<8x15x32xf32>
    %cst_7 = arith.constant dense<0xFF800000> : vector<8x32xf32>
    %15 = vector.multi_reduction <maximumf>, %14, %cst_7 [1] : vector<8x15x32xf32> to vector<8x32xf32>
    %16 = vector.extract_strided_slice %4 {offsets = [0, 0, 64], sizes = [8, 14, 32], strides = [1, 1, 1]} : vector<8x16x288xf32> to vector<8x14x32xf32>
    %17 = vector.extract_strided_slice %4 {offsets = [0, 1, 96], sizes = [8, 14, 32], strides = [1, 1, 1]} : vector<8x16x288xf32> to vector<8x14x32xf32>
    %18 = arith.addf %16, %17 : vector<8x14x32xf32>
    %19 = vector.extract_strided_slice %4 {offsets = [0, 2, 128], sizes = [8, 14, 32], strides = [1, 1, 1]} : vector<8x16x288xf32> to vector<8x14x32xf32>
    %20 = arith.addf %18, %19 : vector<8x14x32xf32>
    %21 = vector.extract_strided_slice %5 {offsets = [0, 32], sizes = [1, 32], strides = [1, 1]} : vector<1x96xf32> to vector<1x32xf32>
    %22 = vector.shape_cast %21 : vector<1x32xf32> to vector<1x1x32xf32>
    %23 = vector.broadcast %22 : vector<1x1x32xf32> to vector<8x14x32xf32>
    %24 = arith.addf %20, %23 : vector<8x14x32xf32>
    %cst_8 = arith.constant 0.000000e+00 : f32
    %25 = vector.broadcast %cst_8 : f32 to vector<8x14x32xf32>
    %26 = arith.maximumf %24, %25 : vector<8x14x32xf32>
    %cst_9 = arith.constant dense<0xFF800000> : vector<8x32xf32>
    %27 = vector.multi_reduction <maximumf>, %26, %cst_9 [1] : vector<8x14x32xf32> to vector<8x32xf32>
    %28 = vector.extract_strided_slice %4 {offsets = [0, 0, 160], sizes = [8, 13, 32], strides = [1, 1, 1]} : vector<8x16x288xf32> to vector<8x13x32xf32>
    %29 = vector.extract_strided_slice %4 {offsets = [0, 1, 192], sizes = [8, 13, 32], strides = [1, 1, 1]} : vector<8x16x288xf32> to vector<8x13x32xf32>
    %30 = arith.addf %28, %29 : vector<8x13x32xf32>
    %31 = vector.extract_strided_slice %4 {offsets = [0, 2, 224], sizes = [8, 13, 32], strides = [1, 1, 1]} : vector<8x16x288xf32> to vector<8x13x32xf32>
    %32 = arith.addf %30, %31 : vector<8x13x32xf32>
    %33 = vector.extract_strided_slice %4 {offsets = [0, 3, 256], sizes = [8, 13, 32], strides = [1, 1, 1]} : vector<8x16x288xf32> to vector<8x13x32xf32>
    %34 = arith.addf %32, %33 : vector<8x13x32xf32>
    %35 = vector.extract_strided_slice %5 {offsets = [0, 64], sizes = [1, 32], strides = [1, 1]} : vector<1x96xf32> to vector<1x32xf32>
    %36 = vector.shape_cast %35 : vector<1x32xf32> to vector<1x1x32xf32>
    %37 = vector.broadcast %36 : vector<1x1x32xf32> to vector<8x13x32xf32>
    %38 = arith.addf %34, %37 : vector<8x13x32xf32>
    %cst_10 = arith.constant 0.000000e+00 : f32
    %39 = vector.broadcast %cst_10 : f32 to vector<8x13x32xf32>
    %40 = arith.maximumf %38, %39 : vector<8x13x32xf32>
    %cst_11 = arith.constant dense<0xFF800000> : vector<8x32xf32>
    %41 = vector.multi_reduction <maximumf>, %40, %cst_11 [1] : vector<8x13x32xf32> to vector<8x32xf32>
    %cst_12 = arith.constant 0.000000e+00 : f32
    %42 = vector.broadcast %cst_12 : f32 to vector<8x32xf32>
    %43 = tpu.concatenate %15, %27, %41, %42 in 1 : vector<8x32xf32>, vector<8x32xf32>, vector<8x32xf32>, vector<8x32xf32> -> vector<8x128xf32>
    %c0_13 = arith.constant 0 : index
    %c0_14 = arith.constant 0 : index
    %44 = vector.load %arg4[%c0_13, %c0_14] : memref<8x128xf32, #tpu.memory_space<vmem>>, vector<8x128xf32>
    tpu.vector_store %arg4[%c0_13, %c0_14], %43 {strides = array<i32>} : memref<8x128xf32, #tpu.memory_space<vmem>>, vector<8x128xf32>,
    return
  }
  func.func @transform_0(%arg0: i32) -> (i32, i32, i32) {
    %c0_i32 = arith.constant 0 : i32
    %c0_i32_0 = arith.constant 0 : i32
    %c0_i32_1 = arith.constant 0 : i32
    return %arg0, %c0_i32, %c0_i32_0 : i32, i32, i32
  }
  func.func @transform_1(%arg0: i32) -> (i32, i32) {
    %c0_i32 = arith.constant 0 : i32
    %c0_i32_0 = arith.constant 0 : i32
    %c0_i32_1 = arith.constant 0 : i32
    return %c0_i32, %c0_i32_0 : i32, i32
  }
  func.func @transform_2(%arg0: i32) -> (i32, i32) {
    %c0_i32 = arith.constant 0 : i32
    %c0_i32_0 = arith.constant 0 : i32
    %c0_i32_1 = arith.constant 0 : i32
    return %c0_i32, %c0_i32_0 : i32, i32
  }
  func.func @transform_3(%arg0: i32) -> (i32, i32) {
    %c0_i32 = arith.constant 0 : i32
    %c0_i32_0 = arith.constant 0 : i32
    return %arg0, %c0_i32 : i32, i32
  }
}

</mosaic_0001>

<bundles_post_ra>
// kernel: tpu_custom_call.1
= control target key start
LH: loop header
LB: loop body
LE: loop exit
PB: predicated region body
PF: predicated region fallthrough
CT: control target
= control target key end

     0   :  { %8 = vsyncpa [#allocation3], 0  ;;  %s2053_s0 = inlined_call_operand.hbm [shape: bf16[8,16,32], index: 0, kind: input, shape index: {}]   ;;  %s2054_s1 = inlined_call_operand.hbm [shape: bf16[32,288], index: 1, kind: input, shape index: {}]   ;;  %s2055_s2 = inlined_call_operand.vmem [shape: f32[1,96], index: 2, kind: input, shape index: {}]   ;;  %s2056_s3 = inlined_call_operand.hbm [shape: f32[8,128], index: 3, kind: output, shape index: {}]  }
   0x1   :  { %9 = vsyncpa [#allocation6], 0 }
   0x2   :  { %10 = vsyncpa [#allocation4], 0  ;;  %s1369_s12 = smov [#allocation2]   ;;  %s1297_s16 = scalar_lea.hbm %s2053_s0, 1024 }
   0x3   :  { %s16_s13 = sshll.u32 %s1369_s12, 4  ;;  %p1298_p0 = scmp.ne.s32.totalorder %s2053_s0, %s1297_s16  ;;  %s17_s13 = int_to_ptr.vmem [resolvable:$true] %s16_s13 }
   0x4   :  { %p1301_p1 = scmp.lt.u32.totalorder %s1297_s16, %s2053_s0 }
   0x6   :  { %p1303_p2 = pnand %p1301_p1, %p1298_p0 }
   0x8   :  { %1306 = shalt.err (!%p1303_p2)
}
   0x9   :  { %s1307_s21 = scalar_lea.vmem %s17_s13, 1024  ;;  %p1312_p4 = scmp.lt.s32.totalorder %s17_s13, %s17_s13 }
   0xa   :  { %p1308_p3 = scmp.ne.s32.totalorder %s17_s13, %s1307_s21  ;;  %p1313_p5 = scmp.lt.s32.totalorder %s1307_s21, %s1307_s21 }
   0xc   :  { %p1314_p6 = por %p1313_p5, %p1312_p4 }
   0xe   :  { %p1315_p7 = pnand %p1314_p6, %p1308_p3 }
  0x10   :  { %1318 = shalt.err (!%p1315_p7)
}
  0x11   :  { %s1370_s22 = smov 64   ;;  %s1371_s23 = smov 4  }
  0x12   :  { %22 = dma.hbm_to_vmem [thread:$0]  %s2053_s0, 1024, %s17_s13, [#allocation3], %s1370_s22, %s1370_s22, %s1371_s23  }
  0x13   :  { %s1372_s26 = smov [#allocation5]   ;;  %s1319_s30 = scalar_lea.hbm %s2054_s1, 768 }
  0x14   :  { %s28_s27 = sshll.u32 %s1372_s26, 4  ;;  %p1320_p8 = scmp.ne.s32.totalorder %s2054_s1, %s1319_s30  ;;  %s29_s27 = int_to_ptr.vmem [resolvable:$true] %s28_s27 }
  0x15   :  { %p1323_p9 = scmp.lt.u32.totalorder %s1319_s30, %s2054_s1 }
  0x17   :  { %p1325_p10 = pnand %p1323_p9, %p1320_p8 }
  0x19   :  { %1328 = shalt.err (!%p1325_p10)
}
  0x1a   :  { %s1329_s8 = scalar_lea.vmem %s29_s27, 768  ;;  %p1334_p12 = scmp.lt.s32.totalorder %s29_s27, %s29_s27 }
  0x1b   :  { %p1330_p11 = scmp.ne.s32.totalorder %s29_s27, %s1329_s8  ;;  %p1335_p13 = scmp.lt.s32.totalorder %s1329_s8, %s1329_s8 }
  0x1d   :  { %p1336_p0 = por %p1335_p13, %p1334_p12 }
  0x1f   :  { %p1337_p1 = pnand %p1336_p0, %p1330_p11 }
  0x21   :  { %1340 = shalt.err (!%p1337_p1)
}
  0x22   :  { %s1373_s0 = smov 192   ;;  %s1374_s9 = smov 12  }
  0x23   :  { %34 = dma.hbm_to_vmem [thread:$0]  %s2054_s1, 768, %s29_s27, [#allocation6], %s1373_s0, %s1373_s0, %s1374_s9  }
  0x24   :  { %1363 = dma.done.wait [#allocation3], 1024  }
  0x25   :  { %1364 = vsyncadd [#allocation3], 4294966272 }
  0x26   :  { %1365 = dma.done.wait [#allocation6], 768  }
  0x27   :  { %1366 = vsyncadd [#allocation6], 4294966528  ;;  %v1375_v0 = vmov 0   ;;  %v1280_v1 = vld [vmem:[#allocation5 + $0x4] ss:$12 sps:$4 sm:$0xff]   ;;  %vm140_vm0 = vcmask 261120  }
  0x28   :  { %197 = vmatprep.mubr.bf16.mxu0 %v1375_v0  ;;  %257 = vmatprep.mubr.bf16.mxu1 %v1375_v0  ;;  %v1282_v2 = vld [vmem:[#allocation5] ss:$12 sps:$4 sm:$0xff]   ;;  %v1283_v3 = vld [vmem:[#allocation5 + $0x1c] ss:$12 sps:$4 sm:$0xff]   ;;  %v1285_v4 = vld [vmem:[#allocation5 + $0x18] ss:$12 sps:$4 sm:$0xff]  }
  0x29   :  { %165 = vmatprep.subr.bf16.mxu0 %v1280_v1  ;;  %1266 = vmatprep.subr.bf16.mxu1 %v1280_v1  ;;  %v1286_v5 = vld [vmem:[#allocation2] sm:$0xff]   ;;  %v1287_v6 = vld [vmem:[#allocation2 + $0x30] sm:$0xff]   ;;  %v1288_v9 = vld [vmem:[#allocation2 + $0x8] sm:$0xff]   ;;  %s1376_s13 = smov 96   ;;  %s1377_s14 = smov 32   ;;  %vm392_vm1 = vcmask 1046528  }
  0x2a   :  { %166 = vmatpush1.bf16.msra.mxu0 %v1282_v2  ;;  %1268 = vmatpush1.bf16.msra.mxu1 %v1282_v2  ;;  %v1290_v7 = vld [vmem:[#allocation5 + $0x8] ss:$12 sps:$4 sm:$0xff]   ;;  %v1291_v8 = vld [vmem:[#allocation5 + $0x20] ss:$12 sps:$4 sm:$0xff]   ;;  %v1289_v10 = vld [vmem:[#allocation2 + $0x38] sm:$0xff]   ;;  %vm608_vm2 = vcmask 1045504  }
  0x2b   :  { %167 = vmatprep.subr.bf16.mxu0 %v1283_v3  ;;  %1267 = vmatprep.subr.bf16.mxu1 %v1283_v3  ;;  %v1292_v11 = vld [vmem:[#allocation2 + $0x10] sm:$0xff]   ;;  %v1293_v12 = vld [vmem:[#allocation2 + $0x18] sm:$0xff]   ;;  %v1294_v13 = vld [vmem:[#allocation2 + $0x20] sm:$0xff]   ;;  %vm926_vm3 = vcmask 1044480   ;;  %vm520_vm4 = vcmask 260096   ;;  %vm734_vm5 = vcmask 783872  }
  0x2c   :  { %v1295_v14 = vld [vmem:[#allocation2 + $0x28] sm:$0xff]   ;;  %v1444_v15 = vld [vmem:[%s2055_s2] ss:$0 sm:$0xff]  ;;  %vm732_vm6 = vcmask 785920   ;;  %vm1132_vm7 = vcmask 1041409   ;;  %vm1052_vm8 = vcmask 520448  }
  0x2d   :  { %1015 = vrot.lane.b32.xlu1 %v1444_v15, %s1376_s13  ;;  %697 = vrot.lane.b32.xlu0 %v1444_v15, %s1377_s14  ;;  %vm1050_vm9 = vcmask 523520   ;;  %vm1134_vm10 = vcmask 1042434   ;;  %vm1136_vm11 = vcmask 1043459   ;;  %vm1138_vm12 = vcmask 1044484  }
  0x2e   :  { %168 = vmatpush1.bf16.msra.mxu0 %v1285_v4  ;;  %1269 = vmatpush1.bf16.msra.mxu1 %v1285_v4  ;;  %vm1140_vm13 = vcmask 1045509   ;;  %vm1142_vm14 = vcmask 1046534   ;;  %vm1144_vm15 = vcmask 1047559  }
  0x2f   :  { %1246 = vmatprep.subr.bf16.mxu1 %v1290_v7 }
  0x31   :  { %1219 = vmatmul.mubr.msk.bf16.vlgmr.msra.gmra.mrb[0].mxu0 %vm140_vm0, %v1286_v5  ;;  %1225 = vmatmul.mubr.msk.bf16.vlgmr.msra.gmra.mrb[0].mxu1 %vm140_vm0, %v1287_v6 }
  0x32   :  { %207 = vmatprep.mubr.bf16.mxu0 %v1375_v0  ;;  %267 = vmatprep.mubr.bf16.mxu1 %v1375_v0 }
  0x33   :  { %1247 = vmatpush3.bf16.msra.mxu1 %v1290_v7 }
  0x34   :  { %1248 = vmatprep.subr.bf16.mxu1 %v1291_v8 }
  0x37   :  { %1249 = vmatpush3.bf16.msra.mxu1 %v1291_v8 }
  0x39   :  { %1220 = vmatmul.mubr.msk.bf16.gmra.mrb[4].mxu0 %vm140_vm0, %v1288_v9  ;;  %1226 = vmatmul.mubr.msk.bf16.gmra.mrb[4].mxu1 %vm140_vm0, %v1289_v10 }
  0x3a   :  { %217 = vmatprep.mubr.bf16.mxu0 %v1375_v0  ;;  %1250 = vmatprep.mubr.msk.bf16.mxu1 %vm140_vm0, %v1286_v5 }
  0x41   :  { %1221 = vmatmul.mubr.msk.bf16.gmra.mrb[8].mxu0 %vm140_vm0, %v1292_v11  ;;  %1251 = vmatmul.mubr.msk.bf16.vlgmr.msra.gmra.mrb[8].mxu1 %vm140_vm0, %v1288_v9 }
  0x42   :  { %227 = vmatprep.mubr.bf16.mxu0 %v1375_v0  ;;  %1254 = vmatprep.mubr.msk.bf16.mxu1 %vm140_vm0, %v1292_v11 }
  0x49   :  { %1222 = vmatmul.mubr.msk.bf16.gmra.mrb[12].mxu0 %vm140_vm0, %v1293_v12  ;;  %1255 = vmatmul.mubr.msk.bf16.gmra.mrb[12].mxu1 %vm140_vm0, %v1293_v12 }
  0x4a   :  { %237 = vmatprep.mubr.bf16.mxu0 %v1375_v0  ;;  %1258 = vmatprep.mubr.msk.bf16.mxu1 %vm140_vm0, %v1294_v13 }
  0x51   :  { %1223 = vmatmul.mubr.msk.bf16.gmra.mrb[16].mxu0 %vm140_vm0, %v1294_v13  ;;  %1259 = vmatmul.mubr.msk.bf16.gmra.mrb[16].mxu1 %vm140_vm0, %v1295_v14 }
  0x52   :  { %247 = vmatprep.mubr.bf16.mxu0 %v1375_v0  ;;  %1262 = vmatprep.mubr.msk.bf16.mxu1 %vm140_vm0, %v1287_v6 }
  0x59   :  { %1224 = vmatmul.mubr.msk.bf16.gmra.mrb[20].mxu0 %vm140_vm0, %v1295_v14  ;;  %1263 = vmatmul.mubr.msk.bf16.gmra.mrb[20].mxu1 %vm140_vm0, %v1289_v10 }
 0x104   :  { %v1450_v16 = vpop.f32.mrb[0].mxu0  ;;  %v1452_v17 = vpop.f32.mrb[0].mxu1 }
 0x105   :  { %v1454_v18 = vpop.f32.mrb[1].mxu0  ;;  %v1456_v19 = vpop.f32.mrb[1].mxu1  ;;  %v393_v20 = vrot.slane %v1450_v16, 1  ;;  %v411_v21 = vrot.slane %v1452_v17, 1 }
 0x106   :  { %v609_v22 = vrot.slane %v1454_v18, 2  ;;  %v806_v23 = vrot.slane %v1454_v18, 1  ;;  %v1462_v24 = vpop.f32.mrb[2].mxu0  ;;  %v1464_v25 = vpop.f32.mrb[2].mxu1  ;;  %v627_v26 = vrot.slane %v1456_v19, 2  ;;  %v824_v27 = vrot.slane %v1456_v19, 1 }
 0x107   :  { %v394_v28 = vrot.slane %v1462_v24, 1  ;;  %v412_v29 = vrot.slane %v1464_v25, 1  ;;  %v1470_v30 = vpop.f32.mrb[3].mxu0  ;;  %v1472_v31 = vpop.f32.mrb[3].mxu1 }
 0x108   :  { %v807_v32 = vrot.slane %v1470_v30, 1  ;;  %v825_v33 = vrot.slane %v1472_v31, 1  ;;  %v610_v34 = vrot.slane %v1470_v30, 2  ;;  %v628_v35 = vrot.slane %v1472_v31, 2 }
 0x109   :  { %443 = vrot.lane.b32.xlu0 %v412_v29, %s1376_s13  ;;  %419 = vrot.lane.b32.xlu1 %v394_v28, %s1376_s13  ;;  %v395_v36 = vsel %vm392_vm1, %v393_v20, %v394_v28  ;;  %v413_v37 = vsel %vm392_vm1, %v411_v21, %v412_v29 }
 0x10a   :  { %v808_v38 = vsel %vm392_vm1, %v806_v23, %v807_v32  ;;  %v826_v39 = vsel %vm392_vm1, %v824_v27, %v825_v33  ;;  %v611_v40 = vsel %vm608_vm2, %v609_v22, %v610_v34  ;;  %v1486_v41 = vsel %vm608_vm2, %v627_v26, %v628_v35 }
 0x10c   :  { %v1488_v42 = vpop.f32.mrb[4].mxu0  ;;  %v1490_v43 = vpop.f32.mrb[4].mxu1 }
 0x10d   :  { %832 = vrot.lane.b32.xlu0 %v807_v32, %s1376_s13  ;;  %635 = vrot.lane.b32.xlu1 %v610_v34, %s1370_s22  ;;  %v396_v44 = vrot.slane %v1488_v42, 1  ;;  %v1495_v45 = vpop.f32.mrb[5].mxu0  ;;  %v414_v46 = vrot.slane %v1490_v43, 1  ;;  %v1498_v47 = vpop.f32.mrb[5].mxu1 }
 0x10e   :  { %2082 = vst [vmem:[#allocation11_spill] sm:$0xff] %v1495_v45  ;;  %2083 = vst [vmem:[#allocation12_spill] sm:$0xff] %v1498_v47  ;;  %v612_v48 = vrot.slane %v1495_v45, 2  ;;  %v809_v49 = vrot.slane %v1495_v45, 1  ;;  %v1502_v50 = vpop.f32.mrb[6].mxu0  ;;  %v630_v51 = vrot.slane %v1498_v47, 2 }
 0x10f   :  { %v827_v52 = vrot.slane %v1498_v47, 1  ;;  %v1506_v53 = vpop.f32.mrb[6].mxu1  ;;  %v397_v54 = vrot.slane %v1502_v50, 1  ;;  %v1509_v55 = vpop.f32.mrb[7].mxu0 }
 0x110   :  { %v415_v56 = vrot.slane %v1506_v53, 1  ;;  %v1512_v57 = vpop.f32.mrb[7].mxu1  ;;  %v810_v58 = vrot.slane %v1509_v55, 1  ;;  %v613_v60 = vrot.slane %v1509_v55, 2 }
 0x111   :  { %v828_v59 = vrot.slane %v1512_v57, 1  ;;  %v2067_v61 = vrot.slane %v1512_v57, 2  ;;  %417 = vrot.lane.b32.xlu0 %v395_v36, %s1376_s13  ;;  %441 = vrot.lane.b32.xlu1 %v413_v37, %s1376_s13  ;;  %v398_v62 = vsel %vm392_vm1, %v396_v44, %v397_v54 }
 0x112   :  { %v1522_v63 = vsel %vm392_vm1, %v414_v46, %v415_v56  ;;  %v1527_v0 = vsel %vm392_vm1, %v809_v49, %v810_v58  ;;  %v1532_v1 = vsel %vm608_vm2, %v612_v48, %v613_v60 }
 0x113   :  { %v1537_v2 = vsel %vm392_vm1, %v827_v52, %v828_v59  ;;  %v1542_v3 = vsel %vm608_vm2, %v630_v51, %v2067_v61 }
 0x114   :  { %v1544_v4 = vpop.f32.mrb[8].mxu0  ;;  %v1252_v5 = vpop.f32.mrb[8].mxu1 }
 0x115   :  { %2084 = vst [vmem:[#allocation13_spill] sm:$0xff] %v1544_v4  ;;  %856 = vrot.lane.b32.xlu0 %v825_v33, %s1376_s13  ;;  %659 = vrot.lane.b32.xlu1 %v628_v35, %s1370_s22  ;;  %v399_v6 = vrot.slane %v1544_v4, 1  ;;  %v1549_v7 = vpop.f32.mrb[9].mxu0  ;;  %v930_v8 = vrot.slane %v1252_v5, 3  ;;  %v312_v9 = vpop.f32.mrb[9].mxu1 }
 0x116   :  { %2085 = vst [vmem:[#allocation14_spill] sm:$0xff] %v1549_v7  ;;  %v615_v10 = vrot.slane %v1549_v7, 2  ;;  %v812_v11 = vrot.slane %v1549_v7, 1  ;;  %v1553_v12 = vpop.f32.mrb[10].mxu0  ;;  %v927_v13 = vrot.slane %v312_v9, 3  ;;  %v1555_v14 = vpop.f32.mrb[10].mxu1 }
 0x117   :  { %v2066_v20 = vrot.slane %v1553_v12, 1  ;;  %v1558_v21 = vpop.f32.mrb[11].mxu0  ;;  %v2065_v22 = vrot.slane %v1555_v14, 3  ;;  %v1561_v23 = vpop.f32.mrb[11].mxu1 }
 0x118   :  { %v2064_v26 = vrot.slane %v1558_v21, 1  ;;  %v2062_v27 = vrot.slane %v1561_v23, 3  ;;  %v2063_v28 = vrot.slane %v1558_v21, 2 }
 0x119   :  { %830 = vrot.lane.b32.xlu0 %v808_v38, %s1376_s13  ;;  %854 = vrot.lane.b32.xlu1 %v826_v39, %s1376_s13  ;;  %v1571_v29 = vsel %vm392_vm1, %v399_v6, %v2066_v20  ;;  %v1576_v32 = vsel %vm926_vm3, %v930_v8, %v2065_v22 }
 0x11a   :  { %v1581_v33 = vsel %vm392_vm1, %v812_v11, %v2064_v26  ;;  %v1586_v34 = vsel %vm608_vm2, %v615_v10, %v2063_v28  ;;  %v1591_v35 = vsel %vm926_vm3, %v927_v13, %v2062_v27 }
 0x11c   :  { %v1256_v36 = vpop.f32.mrb[12].mxu1  ;;  %v1593_v37 = vpop.f32.mrb[12].mxu0 }
 0x11d   :  { %2086 = vst [vmem:[#allocation15_spill] sm:$0xff] %v1593_v37  ;;  %633 = vrot.lane.b32.xlu0 %v611_v40, %s1370_s22  ;;  %423 = vrot.lane.b32.xlu1 %v397_v54, %s1376_s13  ;;  %v936_v38 = vrot.slane %v1256_v36, 3  ;;  %v402_v39 = vrot.slane %v1593_v37, 1  ;;  %v1598_v44 = vpop.f32.mrb[13].mxu0  ;;  %v328_v46 = vpop.f32.mrb[13].mxu1 }
 0x11e   :  { %2087 = vst [vmem:[#allocation16_spill] sm:$0xff] %v1598_v44  ;;  %v618_v48 = vrot.slane %v1598_v44, 2  ;;  %v815_v49 = vrot.slane %v1598_v44, 1  ;;  %v933_v51 = vrot.slane %v328_v46, 3  ;;  %v1602_v52 = vpop.f32.mrb[14].mxu0  ;;  %v1604_v5 = vpop.f32.mrb[14].mxu1 }
 0x11f   :  { %v2057_v6 = vrot.slane %v1602_v52, 1  ;;  %v2061_v40 = vrot.slane %v1604_v5, 3  ;;  %v1608_v54 = vpop.f32.mrb[15].mxu0  ;;  %v1610_v8 = vpop.f32.mrb[15].mxu1 }
 0x120   :  { %v2059_v9 = vrot.slane %v1608_v54, 1  ;;  %v2058_v10 = vrot.slane %v1610_v8, 3  ;;  %v2060_v11 = vrot.slane %v1608_v54, 2 }
 0x121   :  { %657 = vrot.lane.b32.xlu0 %v1486_v41, %s1370_s22  ;;  %447 = vrot.lane.b32.xlu1 %v415_v56, %s1376_s13  ;;  %v1621_v13 = vsel %vm392_vm1, %v402_v39, %v2057_v6  ;;  %v1626_v36 = vsel %vm926_vm3, %v936_v38, %v2061_v40 }
 0x122   :  { %v1631_v46 = vsel %vm392_vm1, %v815_v49, %v2059_v9  ;;  %v1636_v41 = vsel %vm926_vm3, %v933_v51, %v2058_v10  ;;  %v1641_v56 = vsel %vm608_vm2, %v618_v48, %v2060_v11 }
 0x124   :  { %v1643_v39 = vpop.f32.mrb[16].mxu0  ;;  %v1260_v6 = vpop.f32.mrb[16].mxu1 }
 0x125   :  { %2088 = vst [vmem:[#allocation17_spill] sm:$0xff] %v1643_v39  ;;  %421 = vrot.lane.b32.xlu0 %v398_v62, %s1376_s13  ;;  %836 = vrot.lane.b32.xlu1 %v810_v58, %s1376_s13  ;;  %v405_v38 = vrot.slane %v1643_v39, 1  ;;  %v1650_v49 = vpop.f32.mrb[17].mxu0  ;;  %v942_v51 = vrot.slane %v1260_v6, 3  ;;  %v344_v10 = vpop.f32.mrb[17].mxu1 }
 0x126   :  { %2089 = vst [vmem:[#allocation18_spill] sm:$0xff] %v1650_v49  ;;  %v621_v9 = vrot.slane %v1650_v49, 2  ;;  %v818_v48 = vrot.slane %v1650_v49, 1  ;;  %v1654_v11 = vpop.f32.mrb[18].mxu0  ;;  %v939_v40 = vrot.slane %v344_v10, 3  ;;  %v1656_v27 = vpop.f32.mrb[18].mxu1 }
 0x127   :  { %2090 = vst [vmem:[#allocation19_spill] sm:$0xff] %v1654_v11  ;;  %v406_v62 = vrot.slane %v1654_v11, 1  ;;  %v1659_v28 = vpop.f32.mrb[19].mxu0  ;;  %v943_v58 = vrot.slane %v1656_v27, 3  ;;  %v1662_v26 = vpop.f32.mrb[19].mxu1 }
 0x128   :  { %2091 = vst [vmem:[#allocation20_spill] sm:$0xff] %v1659_v28  ;;  %v819_v6 = vrot.slane %v1659_v28, 1  ;;  %v2072_v22 = vrot.slane %v1662_v26, 3  ;;  %v622_v20 = vrot.slane %v1659_v28, 2 }
 0x129   :  { %860 = vrot.lane.b32.xlu0 %v828_v59, %s1376_s13  ;;  %639 = vrot.lane.b32.xlu1 %v613_v60, %s1370_s22  ;;  %v407_v10 = vsel %vm392_vm1, %v405_v38, %v406_v62  ;;  %v944_v27 = vsel %vm926_vm3, %v942_v51, %v943_v58  ;;  %v2093_v59 = vrot.slane %v1512_v57, 2 }
 0x12a   :  { %v820_v61 = vsel %vm392_vm1, %v818_v48, %v819_v6  ;;  %v623_v49 = vsel %vm608_vm2, %v621_v9, %v622_v20  ;;  %v941_v28 = vsel %vm926_vm3, %v939_v40, %v2072_v22 }
 0x12c   :  { %v1680_v39 = vpop.f32.mrb[20].mxu0  ;;  %v1264_v11 = vpop.f32.mrb[20].mxu1 }
 0x12d   :  { %2092 = vst [vmem:[#allocation21_spill] sm:$0xff] %v1680_v39  ;;  %445 = vrot.lane.b32.xlu0 %v1522_v63, %s1376_s13  ;;  %663 = vrot.lane.b32.xlu1 %v2093_v59, %s1370_s22  ;;  %v408_v60 = vrot.slane %v1680_v39, 1  ;;  %v1688_v38 = vpop.f32.mrb[21].mxu0  ;;  %v948_v51 = vrot.slane %v1264_v11, 3  ;;  %v360_v9 = vpop.f32.mrb[21].mxu1 }
 0x12e   :  { %2094 = vst [vmem:[#allocation22_spill] sm:$0xff] %v1688_v38  ;;  %v624_v48 = vrot.slane %v1688_v38, 2  ;;  %v821_v40 = vrot.slane %v1688_v38, 1  ;;  %v1692_v22 = vpop.f32.mrb[22].mxu0  ;;  %v945_v44 = vrot.slane %v360_v9, 3  ;;  %v1694_v7 = vpop.f32.mrb[22].mxu1 }
 0x12f   :  { %2095 = vst [vmem:[#allocation23_spill] sm:$0xff] %v1692_v22  ;;  %v409_v63 = vrot.slane %v1692_v22, 1  ;;  %v1697_v37 = vpop.f32.mrb[23].mxu0  ;;  %v949_v59 = vrot.slane %v1694_v7, 3  ;;  %v363_v39 = vpop.f32.mrb[23].mxu1 }
 0x130   :  { %v822_v4 = vrot.slane %v1697_v37, 1  ;;  %v946_v11 = vrot.slane %v363_v39, 3  ;;  %v625_v47 = vrot.slane %v1697_v37, 2 }
 0x131   :  { %834 = vrot.lane.b32.xlu1 %v1527_v0, %s1376_s13  ;;  %637 = vrot.lane.b32.xlu0 %v1532_v1, %s1370_s22  ;;  %v410_v9 = vsel %vm392_vm1, %v408_v60, %v409_v63  ;;  %v950_v38 = vsel %vm926_vm3, %v948_v51, %v949_v59  ;;  %v2096_v0 = vrot.slane %v1553_v12, 1  ;;  %v2097_v1 = vrot.slane %v1555_v14, 3 }
 0x132   :  { %v823_v22 = vsel %vm392_vm1, %v821_v40, %v822_v4  ;;  %v947_v45 = vsel %vm926_vm3, %v945_v44, %v946_v11  ;;  %v626_v39 = vsel %vm608_vm2, %v624_v48, %v625_v47  ;;  %v2100_v14 = vrot.slane %v1561_v23, 3  ;;  %v1781_v44 = vpop.permute.xlu1 %1015 }
 0x133   :  { %v2104_v23 = vrot.slane %v1610_v8, 3  ;;  %vm1184_vm1 = vcmask 523264   ;;  %vm1186_vm2 = vcmask 785408  }
 0x135   :  { %858 = vrot.lane.b32.xlu1 %v1537_v2, %s1376_s13  ;;  %661 = vrot.lane.b32.xlu0 %v1542_v3, %s1370_s22  ;;  %v2098_v2 = vrot.slane %v1558_v21, 1  ;;  %v2099_v3 = vrot.slane %v1558_v21, 2 }
 0x139   :  { %427 = vrot.lane.b32.xlu1 %v2096_v0, %s1376_s13  ;;  %425 = vrot.lane.b32.xlu0 %v1571_v29, %s1376_s13  ;;  %v2101_v29 = vrot.slane %v1604_v5, 3  ;;  %v1783_v5 = vpop.permute.xlu0 %697 }
 0x13d   :  { %957 = vrot.lane.b32.xlu1 %v2097_v1, %s1377_s14  ;;  %955 = vrot.lane.b32.xlu0 %v1576_v32, %s1377_s14  ;;  %v2102_v32 = vrot.slane %v1602_v52, 1 }
 0x141   :  { %840 = vrot.lane.b32.xlu1 %v2098_v2, %s1376_s13  ;;  %838 = vrot.lane.b32.xlu0 %v1581_v33, %s1376_s13  ;;  %v2103_v33 = vrot.slane %v1608_v54, 1 }
 0x145   :  { %643 = vrot.lane.b32.xlu1 %v2099_v3, %s1370_s22  ;;  %641 = vrot.lane.b32.xlu0 %v1586_v34, %s1370_s22  ;;  %v2105_v34 = vrot.slane %v1608_v54, 2 }
 0x149   :  { %953 = vrot.lane.b32.xlu1 %v2100_v14, %s1377_s14  ;;  %951 = vrot.lane.b32.xlu0 %v1591_v35, %s1377_s14  ;;  %v2106_v35 = vrot.slane %v1662_v26, 3 }
 0x14d   :  { %965 = vrot.lane.b32.xlu0 %v2101_v29, %s1377_s14  ;;  %431 = vrot.lane.b32.xlu1 %v2102_v32, %s1376_s13 }
 0x151   :  { %429 = vrot.lane.b32.xlu0 %v1621_v13, %s1376_s13  ;;  %844 = vrot.lane.b32.xlu1 %v2103_v33, %s1376_s13 }
 0x155   :  { %961 = vrot.lane.b32.xlu0 %v2104_v23, %s1377_s14  ;;  %647 = vrot.lane.b32.xlu1 %v2105_v34, %s1370_s22 }
 0x159   :  { %842 = vrot.lane.b32.xlu0 %v1631_v46, %s1376_s13  ;;  %963 = vrot.lane.b32.xlu1 %v1626_v36, %s1377_s14 }
 0x15d   :  { %959 = vrot.lane.b32.xlu1 %v1636_v41, %s1377_s14  ;;  %645 = vrot.lane.b32.xlu0 %v1641_v56, %s1370_s22 }
 0x161   :  { %435 = vrot.lane.b32.xlu1 %v406_v62, %s1376_s13  ;;  %433 = vrot.lane.b32.xlu0 %v407_v10, %s1376_s13 }
 0x165   :  { %973 = vrot.lane.b32.xlu1 %v943_v58, %s1377_s14  ;;  %971 = vrot.lane.b32.xlu0 %v944_v27, %s1377_s14 }
 0x169   :  { %848 = vrot.lane.b32.xlu1 %v819_v6, %s1376_s13  ;;  %846 = vrot.lane.b32.xlu0 %v820_v61, %s1376_s13 }
 0x16d   :  { %651 = vrot.lane.b32.xlu1 %v622_v20, %s1370_s22  ;;  %649 = vrot.lane.b32.xlu0 %v623_v49, %s1370_s22 }
 0x171   :  { %969 = vrot.lane.b32.xlu1 %v2106_v35, %s1377_s14  ;;  %967 = vrot.lane.b32.xlu0 %v941_v28, %s1377_s14 }
 0x175   :  { %439 = vrot.lane.b32.xlu1 %v409_v63, %s1376_s13  ;;  %437 = vrot.lane.b32.xlu0 %v410_v9, %s1376_s13 }
 0x179   :  { %852 = vrot.lane.b32.xlu1 %v822_v4, %s1376_s13  ;;  %655 = vrot.lane.b32.xlu0 %v625_v47, %s1370_s22 }
 0x17b   :  { %v444_v61 = vpop.permute.xlu0 %443  ;;  %v420_v20 = vpop.permute.xlu1 %419 }
 0x17c   :  { %v478_v8 = vadd.f32 %v444_v61, %v1464_v25  ;;  %v466_v26 = vadd.f32 %v420_v20, %v1462_v24 }
 0x17d   :  { %977 = vrot.lane.b32.xlu1 %v946_v11, %s1377_s14  ;;  %850 = vrot.lane.b32.xlu0 %v823_v22, %s1376_s13 }
 0x17e   :  { %v500_v41 = vadd.f32 %v1444_v15, %v478_v8  ;;  %v488_v47 = vadd.f32 %v1444_v15, %v466_v26 }
 0x17f   :  { %v833_v28 = vpop.permute.xlu0 %832  ;;  %v636_v13 = vpop.permute.xlu1 %635 }
 0x180   :  { %v879_v36 = vadd.f32 %v833_v28, %v1470_v30  ;;  %v682_v46 = vadd.f32 %v636_v13, %v466_v26  ;;  %v516_v49 = vmax.f32 %v500_v41, 0.0  ;;  %v504_v30 = vmax.f32 %v488_v47, 0.0 }
 0x181   :  { %975 = vrot.lane.b32.xlu0 %v947_v45, %s1377_s14  ;;  %653 = vrot.lane.b32.xlu1 %v626_v39, %s1370_s22 }
 0x182   :  { %v1796_v25 = vadd.f32 %v879_v36, %v636_v13  ;;  %v575_v60 = vsel %vm520_vm4, %v516_v49, -inf  ;;  %v701_v39 = vadd.f32 %v1783_v5, %v682_v46 }
 0x183   :  { %v418_v24 = vpop.permute.xlu0 %417  ;;  %v442_v4 = vpop.permute.xlu1 %441 }
 0x184   :  { %v465_v56 = vadd.f32 %v418_v24, %v1450_v16  ;;  %v477_v22 = vadd.f32 %v442_v4, %v1452_v17  ;;  %v717_v29 = vmax.f32 %v701_v39, 0.0 }
 0x185   :  { %979 = vrot.lane.b32.xlu0 %v950_v38, %s1377_s14  ;;  %981 = vrot.lane.b32.xlu1 %v949_v59, %s1377_s14  ;;  %v521_v38 = vsel %vm520_vm4, %v504_v30, -inf }
 0x186   :  { %v487_v45 = vadd.f32 %v1444_v15, %v465_v56  ;;  %v499_v62 = vadd.f32 %v1444_v15, %v477_v22  ;;  %v735_v61 = vsel %vm734_vm5, %v717_v29, -inf }
 0x187   :  { %v857_v58 = vpop.permute.xlu0 %856  ;;  %v660_v6 = vpop.permute.xlu1 %659 }
 0x188   :  { %v503_v10 = vmax.f32 %v487_v45, 0.0  ;;  %v515_v27 = vmax.f32 %v499_v62, 0.0  ;;  %v891_v16 = vadd.f32 %v857_v58, %v1472_v31  ;;  %v694_v17 = vadd.f32 %v660_v6, %v478_v8 }
 0x18a   :  { %v519_v7 = vsel %vm140_vm0, %v503_v10, -inf  ;;  %v574_v51 = vsel %vm140_vm0, %v515_v27, -inf  ;;  %v1811_v48 = vadd.f32 %v891_v16, %v660_v6  ;;  %v713_v32 = vadd.f32 %v1783_v5, %v694_v17 }
 0x18b   :  { %v522_v40 = vmax.f32 %v519_v7, %v521_v38  ;;  %v1813_v63 = vmax.f32 %v574_v51, %v575_v60  ;;  %v831_v59 = vpop.permute.xlu0 %830  ;;  %v855_v11 = vpop.permute.xlu1 %854 }
 0x18c   :  { %v878_v9 = vadd.f32 %v831_v59, %v1454_v18  ;;  %v890_v31 = vadd.f32 %v855_v11, %v1456_v19  ;;  %v729_v8 = vmax.f32 %v713_v32, 0.0 }
 0x18d   :  { %v523_v13 = vrot.slane %v522_v40, 4 }
 0x18f   :  { %v634_v0 = vpop.permute.xlu0 %633  ;;  %v424_v1 = vpop.permute.xlu1 %423  ;;  %v524_v30 = vmax.f32 %v522_v40, %v523_v13 }
 0x190   :  { %v681_v2 = vadd.f32 %v634_v0, %v465_v56  ;;  %v1818_v3 = vadd.f32 %v878_v9, %v634_v0  ;;  %v468_v14 = vadd.f32 %v424_v1, %v1502_v50  ;;  %v789_v56 = vsel %vm734_vm5, %v729_v8, -inf }
 0x191   :  { %v525_v60 = vrot.slane %v524_v30, 2 }
 0x192   :  { %v700_v33 = vadd.f32 %v1783_v5, %v681_v2  ;;  %v490_v26 = vadd.f32 %v1444_v15, %v468_v14 }
 0x193   :  { %v658_v23 = vpop.permute.xlu0 %657  ;;  %v448_v18 = vpop.permute.xlu1 %447  ;;  %v526_v0 = vmax.f32 %v524_v30, %v525_v60 }
 0x194   :  { %v716_v34 = vmax.f32 %v700_v33, 0.0  ;;  %v693_v19 = vadd.f32 %v658_v23, %v477_v22  ;;  %v1823_v35 = vadd.f32 %v890_v31, %v658_v23  ;;  %v480_v20 = vadd.f32 %v448_v18, %v1506_v53  ;;  %v2107_v33 = vld [vmem:[#allocation11_spill] sm:$0xff] }
 0x195   :  { %v506_v22 = vmax.f32 %v490_v26, 0.0  ;;  %v527_v26 = vrot.slane %v526_v0, 1 }
 0x196   :  { %v733_v50 = vsel %vm732_vm6, %v716_v34, -inf  ;;  %v712_v28 = vadd.f32 %v1783_v5, %v693_v19 }
 0x197   :  { %v736_v36 = vmax.f32 %v733_v50, %v735_v61  ;;  %v422_v46 = vpop.permute.xlu0 %421  ;;  %v837_v41 = vpop.permute.xlu1 %836 }
 0x198   :  { %v728_v47 = vmax.f32 %v712_v28, 0.0  ;;  %v467_v24 = vadd.f32 %v422_v46, %v1488_v42  ;;  %v881_v4 = vadd.f32 %v837_v41, %v1509_v55  ;;  %v502_v42 = vadd.f32 %v1444_v15, %v480_v20 }
 0x199   :  { %v530_v55 = vsel %vm520_vm4, %v506_v22, -inf  ;;  %v737_v1 = vrot.slane %v736_v36, 4 }
 0x19a   :  { %v788_v53 = vsel %vm732_vm6, %v728_v47, -inf  ;;  %v489_v49 = vadd.f32 %v1444_v15, %v467_v24  ;;  %v518_v9 = vmax.f32 %v502_v42, 0.0 }
 0x19b   :  { %v1835_v45 = vmax.f32 %v788_v53, %v789_v56  ;;  %v861_v62 = vpop.permute.xlu0 %860  ;;  %v640_v58 = vpop.permute.xlu1 %639  ;;  %v738_v28 = vmax.f32 %v736_v36, %v737_v1  ;;  %v528_v36 = vmax.f32 %v526_v0, %v527_v26 }
 0x19c   :  { %v505_v6 = vmax.f32 %v489_v49, 0.0  ;;  %v893_v10 = vadd.f32 %v861_v62, %v1512_v57  ;;  %v684_v27 = vadd.f32 %v640_v58, %v468_v14  ;;  %v1838_v16 = vadd.f32 %v881_v4, %v640_v58 }
 0x19e   :  { %v529_v17 = vsel %vm140_vm0, %v505_v6, -inf  ;;  %v703_v31 = vadd.f32 %v1783_v5, %v684_v27 }
 0x19f   :  { %v531_v38 = vmax.f32 %v529_v17, %v530_v55  ;;  %v446_v7 = vpop.permute.xlu0 %445  ;;  %v664_v51 = vpop.permute.xlu1 %663 }
 0x1a0   :  { %v479_v40 = vadd.f32 %v446_v7, %v1490_v43  ;;  %v696_v59 = vadd.f32 %v664_v51, %v480_v20  ;;  %v1844_v11 = vadd.f32 %v893_v10, %v664_v51  ;;  %v584_v43 = vsel %vm520_vm4, %v518_v9, -inf  ;;  %v2109_v7 = vld [vmem:[#allocation13_spill] sm:$0xff] }
 0x1a1   :  { %v532_v57 = vrot.slane %v531_v38, 4  ;;  %v719_v19 = vmax.f32 %v703_v31, 0.0  ;;  %v739_v10 = vrot.slane %v738_v28, 2 }
 0x1a2   :  { %v501_v39 = vadd.f32 %v1444_v15, %v479_v40  ;;  %v715_v20 = vadd.f32 %v1783_v5, %v696_v59 }
 0x1a3   :  { %v533_v2 = vmax.f32 %v531_v38, %v532_v57  ;;  %v835_v14 = vpop.permute.xlu1 %834  ;;  %v638_v29 = vpop.permute.xlu0 %637  ;;  %v744_v49 = vsel %vm734_vm5, %v719_v19, -inf  ;;  %v740_v0 = vmax.f32 %v738_v28, %v739_v10 }
 0x1a4   :  { %v517_v32 = vmax.f32 %v501_v39, 0.0  ;;  %v880_v23 = vadd.f32 %v835_v14, %v2107_v33  ;;  %v683_v18 = vadd.f32 %v638_v29, %v467_v24  ;;  %v2108_v24 = vld [vmem:[#allocation12_spill] sm:$0xff]  ;;  %v731_v30 = vmax.f32 %v715_v20, 0.0 }
 0x1a5   :  { %v534_v34 = vrot.slane %v533_v2, 2  ;;  %v741_v20 = vrot.slane %v740_v0, 1 }
 0x1a6   :  { %v583_v61 = vsel %vm140_vm0, %v517_v32, -inf  ;;  %v702_v8 = vadd.f32 %v1783_v5, %v683_v18  ;;  %v896_v50 = vadd.f32 %v880_v23, %v638_v29  ;;  %v798_v9 = vsel %vm734_vm5, %v731_v30, -inf }
 0x1a7   :  { %v535_v13 = vmax.f32 %v533_v2, %v534_v34  ;;  %v1853_v46 = vmax.f32 %v583_v61, %v584_v43  ;;  %v859_v41 = vpop.permute.xlu1 %858  ;;  %v662_v47 = vpop.permute.xlu0 %661 }
 0x1a8   :  { %v718_v4 = vmax.f32 %v702_v8, 0.0  ;;  %v892_v56 = vadd.f32 %v859_v41, %v2108_v24  ;;  %v695_v22 = vadd.f32 %v662_v47, %v479_v40 }
 0x1a9   :  { %v536_v53 = vrot.slane %v535_v13, 1 }
 0x1aa   :  { %v743_v62 = vsel %vm732_vm6, %v718_v4, -inf  ;;  %v714_v58 = vadd.f32 %v1783_v5, %v695_v22  ;;  %v1859_v6 = vadd.f32 %v892_v56, %v662_v47  ;;  %v742_v56 = vmax.f32 %v740_v0, %v741_v20 }
 0x1ab   :  { %v537_v27 = vmax.f32 %v535_v13, %v536_v53  ;;  %v745_v42 = vmax.f32 %v743_v62, %v744_v49  ;;  %v428_v55 = vpop.permute.xlu1 %427  ;;  %v426_v17 = vpop.permute.xlu0 %425 }
 0x1ac   :  { %v730_v60 = vmax.f32 %v714_v58, 0.0  ;;  %v470_v38 = vadd.f32 %v428_v55, %v1553_v12  ;;  %v469_v51 = vadd.f32 %v426_v17, %v2109_v7 }
 0x1ad   :  { %v1864_v40 = vsel %vm1132_vm7, %v537_v27, %v528_v36  ;;  %v746_v59 = vrot.slane %v745_v42, 4 }
 0x1ae   :  { %v797_v57 = vsel %vm732_vm6, %v730_v60, -inf  ;;  %v492_v31 = vadd.f32 %v1444_v15, %v470_v38  ;;  %v491_v39 = vadd.f32 %v1444_v15, %v469_v51 }
 0x1af   :  { %v747_v1 = vmax.f32 %v745_v42, %v746_v59  ;;  %v1870_v2 = vmax.f32 %v797_v57, %v798_v9  ;;  %v958_v14 = vpop.permute.xlu1 %957  ;;  %v956_v12 = vpop.permute.xlu0 %955 }
 0x1b0   :  { %v508_v29 = vmax.f32 %v492_v31, 0.0  ;;  %v507_v32 = vmax.f32 %v491_v39, 0.0  ;;  %v1002_v33 = vadd.f32 %v958_v14, %v1838_v16  ;;  %v1001_v23 = vadd.f32 %v956_v12, %v896_v50 }
 0x1b1   :  { %v748_v18 = vrot.slane %v747_v1, 2 }
 0x1b2   :  { %v539_v43 = vsel %vm520_vm4, %v508_v29, -inf  ;;  %v538_v34 = vsel %vm140_vm0, %v507_v32, -inf  ;;  %v1021_v19 = vadd.f32 %v1781_v44, %v1002_v33  ;;  %v1020_v61 = vadd.f32 %v1781_v44, %v1001_v23 }
 0x1b3   :  { %v749_v8 = vmax.f32 %v747_v1, %v748_v18  ;;  %v540_v26 = vmax.f32 %v538_v34, %v539_v43  ;;  %v841_v28 = vpop.permute.xlu1 %840  ;;  %v1877_v13 = vpop.permute.xlu0 %838 }
 0x1b4   :  { %v1037_v41 = vmax.f32 %v1021_v19, 0.0  ;;  %v1036_v16 = vmax.f32 %v1020_v61, 0.0 }
 0x1b5   :  { %v750_v50 = vrot.slane %v749_v8, 1  ;;  %v541_v47 = vrot.slane %v540_v26, 4 }
 0x1b6   :  { %v1062_v4 = vsel %vm1052_vm8, %v1037_v41, -inf  ;;  %v1061_v24 = vsel %vm1050_vm9, %v1036_v16, -inf }
 0x1b7   :  { %v751_v22 = vmax.f32 %v749_v8, %v750_v50  ;;  %v542_v53 = vmax.f32 %v540_v26, %v541_v47  ;;  %v1063_v49 = vmax.f32 %v1061_v24, %v1062_v4  ;;  %v644_v30 = vpop.permute.xlu1 %643  ;;  %v1881_v62 = vpop.permute.xlu0 %641  ;;  %v883_v26 = vadd.f32 %v841_v28, %v1558_v21  ;;  %v2110_v4 = vld [vmem:[#allocation15_spill] sm:$0xff] }
 0x1b8   :  { %v686_v58 = vadd.f32 %v644_v30, %v470_v38  ;;  %v685_v36 = vadd.f32 %v1881_v62, %v469_v51 }
 0x1b9   :  { %v543_v10 = vrot.slane %v542_v53, 2  ;;  %v1064_v27 = vrot.slane %v1063_v49, 4  ;;  %v1885_v42 = vsel %vm1132_vm7, %v751_v22, %v742_v56  ;;  %v899_v24 = vadd.f32 %v883_v26, %v644_v30 }
 0x1ba   :  { %v705_v55 = vadd.f32 %v1783_v5, %v686_v58  ;;  %v704_v17 = vadd.f32 %v1783_v5, %v685_v36 }
 0x1bb   :  { %v544_v60 = vmax.f32 %v542_v53, %v543_v10  ;;  %v954_v7 = vpop.permute.xlu1 %953  ;;  %v952_v59 = vpop.permute.xlu0 %951  ;;  %v1065_v51 = vmax.f32 %v1063_v49, %v1064_v27 }
 0x1bc   :  { %v721_v9 = vmax.f32 %v705_v55, 0.0  ;;  %v720_v57 = vmax.f32 %v704_v17, 0.0  ;;  %v1000_v31 = vadd.f32 %v954_v7, %v1796_v25  ;;  %v999_v38 = vadd.f32 %v952_v59, %v1818_v3 }
 0x1bd   :  { %v545_v39 = vrot.slane %v544_v60, 1  ;;  %v1066_v19 = vrot.slane %v1065_v51, 2 }
 0x1be   :  { %v753_v0 = vsel %vm734_vm5, %v721_v9, -inf  ;;  %v752_v1 = vsel %vm732_vm6, %v720_v57, -inf  ;;  %v1019_v14 = vadd.f32 %v1781_v44, %v1000_v31  ;;  %v1018_v12 = vadd.f32 %v1781_v44, %v999_v38 }
 0x1bf   :  { %v546_v29 = vmax.f32 %v544_v60, %v545_v39  ;;  %v754_v32 = vmax.f32 %v752_v1, %v753_v0  ;;  %v966_v33 = vpop.permute.xlu0 %965  ;;  %v432_v23 = vpop.permute.xlu1 %431  ;;  %v2111_v1 = vld [vmem:[#allocation14_spill] sm:$0xff] }
 0x1c0   :  { %v1035_v18 = vmax.f32 %v1019_v14, 0.0  ;;  %v1034_v43 = vmax.f32 %v1018_v12, 0.0  ;;  %v472_v25 = vadd.f32 %v432_v23, %v1602_v52  ;;  %v882_v14 = vadd.f32 %v1877_v13, %v2111_v1 }
 0x1c1   :  { %v755_v3 = vrot.slane %v754_v32, 4  ;;  %v1898_v34 = vsel %vm1134_vm10, %v546_v29, %v1864_v40  ;;  %v1067_v40 = vmax.f32 %v1065_v51, %v1066_v19 }
 0x1c2   :  { %v1053_v61 = vsel %vm1052_vm8, %v1035_v18, -inf  ;;  %v1051_v20 = vsel %vm1050_vm9, %v1034_v43, -inf  ;;  %v494_v8 = vadd.f32 %v1444_v15, %v472_v25  ;;  %v898_v43 = vadd.f32 %v882_v14, %v1881_v62 }
 0x1c3   :  { %v756_v41 = vmax.f32 %v754_v32, %v755_v3  ;;  %v1054_v16 = vmax.f32 %v1051_v20, %v1053_v61  ;;  %v430_v50 = vpop.permute.xlu0 %429  ;;  %v845_v47 = vpop.permute.xlu1 %844  ;;  %v1068_v9 = vrot.slane %v1067_v40, 1 }
 0x1c4   :  { %v471_v52 = vadd.f32 %v430_v50, %v2110_v4  ;;  %v510_v53 = vmax.f32 %v494_v8, 0.0  ;;  %v885_v58 = vadd.f32 %v845_v47, %v1608_v54 }
 0x1c5   :  { %v757_v56 = vrot.slane %v756_v41, 2  ;;  %v1055_v22 = vrot.slane %v1054_v16, 4 }
 0x1c6   :  { %v493_v49 = vadd.f32 %v1444_v15, %v471_v52  ;;  %v548_v30 = vsel %vm520_vm4, %v510_v53, -inf }
 0x1c7   :  { %v758_v36 = vmax.f32 %v756_v41, %v757_v56  ;;  %v1056_v10 = vmax.f32 %v1054_v16, %v1055_v22  ;;  %v962_v27 = vpop.permute.xlu0 %961  ;;  %v648_v55 = vpop.permute.xlu1 %647  ;;  %v577_v22 = vrot.slane %v1813_v63, 4 }
 0x1c8   :  { %v509_v21 = vmax.f32 %v493_v49, 0.0  ;;  %v1004_v28 = vadd.f32 %v962_v27, %v899_v24  ;;  %v901_v17 = vadd.f32 %v885_v58, %v648_v55  ;;  %v688_v59 = vadd.f32 %v648_v55, %v472_v25  ;;  %v2112_v25 = vld [vmem:[#allocation16_spill] sm:$0xff]  ;;  %v2113_v27 = vld [vmem:[#allocation19_spill] sm:$0xff] }
 0x1c9   :  { %v759_v60 = vrot.slane %v758_v36, 1  ;;  %v1057_v7 = vrot.slane %v1056_v10, 2 }
 0x1ca   :  { %v547_v57 = vsel %vm140_vm0, %v509_v21, -inf  ;;  %v1006_v51 = vadd.f32 %v966_v33, %v901_v17  ;;  %v1023_v12 = vadd.f32 %v1781_v44, %v1004_v28  ;;  %v707_v23 = vadd.f32 %v1783_v5, %v688_v59 }
 0x1cb   :  { %v760_v31 = vmax.f32 %v758_v36, %v759_v60  ;;  %v1058_v38 = vmax.f32 %v1056_v10, %v1057_v7  ;;  %v549_v39 = vmax.f32 %v547_v57, %v548_v30  ;;  %v843_v54 = vpop.permute.xlu0 %842  ;;  %v964_v0 = vpop.permute.xlu1 %963  ;;  %v1069_v33 = vmax.f32 %v1067_v40, %v1068_v9  ;;  %v2114_v60 = vld [vmem:[#allocation17_spill] sm:$0xff] }
 0x1cc   :  { %v884_v3 = vadd.f32 %v843_v54, %v2112_v25  ;;  %v1025_v20 = vadd.f32 %v1781_v44, %v1006_v51  ;;  %v1039_v47 = vmax.f32 %v1023_v12, 0.0  ;;  %v723_v4 = vmax.f32 %v707_v23, 0.0 }
 0x1cd   :  { %v1059_v29 = vrot.slane %v1058_v38, 1  ;;  %v550_v32 = vrot.slane %v549_v39, 4  ;;  %v1915_v18 = vsel %vm1134_vm10, %v760_v31, %v1885_v42  ;;  %v578_v25 = vmax.f32 %v1813_v63, %v577_v22 }
 0x1ce   :  { %v1041_v53 = vmax.f32 %v1025_v20, 0.0  ;;  %v1071_v28 = vsel %vm1052_vm8, %v1039_v47, -inf  ;;  %v762_v17 = vsel %vm734_vm5, %v723_v4, -inf }
 0x1cf   :  { %v1060_v19 = vmax.f32 %v1058_v38, %v1059_v29  ;;  %v551_v61 = vmax.f32 %v549_v39, %v550_v32  ;;  %v960_v13 = vpop.permute.xlu1 %959  ;;  %v646_v8 = vpop.permute.xlu0 %645  ;;  %v579_v63 = vrot.slane %v578_v25, 2 }
 0x1d0   :  { %v1003_v26 = vadd.f32 %v960_v13, %v898_v43  ;;  %v687_v41 = vadd.f32 %v646_v8, %v471_v52  ;;  %v900_v16 = vadd.f32 %v884_v3, %v646_v8  ;;  %v1080_v1 = vsel %vm1052_vm8, %v1041_v53, -inf }
 0x1d1   :  { %v552_v50 = vrot.slane %v551_v61, 2  ;;  %v1921_v42 = vsel %vm1132_vm7, %v1069_v33, %v1060_v19  ;;  %v586_v3 = vrot.slane %v1853_v46, 4 }
 0x1d2   :  { %v1022_v62 = vadd.f32 %v1781_v44, %v1003_v26  ;;  %v706_v24 = vadd.f32 %v1783_v5, %v687_v41  ;;  %v1005_v56 = vadd.f32 %v964_v0, %v900_v16 }
 0x1d3   :  { %v553_v40 = vmax.f32 %v551_v61, %v552_v50  ;;  %v436_v49 = vpop.permute.xlu1 %435  ;;  %v434_v58 = vpop.permute.xlu0 %433 }
 0x1d4   :  { %v1038_v52 = vmax.f32 %v1022_v62, 0.0  ;;  %v722_v36 = vmax.f32 %v706_v24, 0.0  ;;  %v1024_v10 = vadd.f32 %v1781_v44, %v1005_v56  ;;  %v474_v55 = vadd.f32 %v436_v49, %v2113_v27  ;;  %v2115_v49 = vld [vmem:[#allocation20_spill] sm:$0xff] }
 0x1d5   :  { %v554_v21 = vrot.slane %v553_v40, 1  ;;  %v473_v7 = vadd.f32 %v434_v58, %v2114_v60  ;;  %v1950_v62 = vmax.f32 %v1853_v46, %v586_v3 }
 0x1d6   :  { %v1070_v59 = vsel %vm1050_vm9, %v1038_v52, -inf  ;;  %v761_v9 = vsel %vm732_vm6, %v722_v36, -inf  ;;  %v1040_v30 = vmax.f32 %v1024_v10, 0.0  ;;  %v496_v57 = vadd.f32 %v1444_v15, %v474_v55 }
 0x1d7   :  { %v555_v31 = vmax.f32 %v553_v40, %v554_v21  ;;  %v1072_v38 = vmax.f32 %v1070_v59, %v1071_v28  ;;  %v763_v39 = vmax.f32 %v761_v9, %v762_v17  ;;  %v495_v51 = vadd.f32 %v1444_v15, %v473_v7  ;;  %v1935_v54 = vpop.permute.xlu1 %973  ;;  %v1937_v0 = vpop.permute.xlu0 %971  ;;  %v2116_v28 = vld [vmem:[#allocation18_spill] sm:$0xff] }
 0x1d8   :  { %v1079_v14 = vsel %vm1050_vm9, %v1040_v30, -inf  ;;  %v512_v12 = vmax.f32 %v496_v57, 0.0 }
 0x1d9   :  { %v1073_v29 = vrot.slane %v1072_v38, 4  ;;  %v764_v32 = vrot.slane %v763_v39, 4  ;;  %v1081_v23 = vmax.f32 %v1079_v14, %v1080_v1  ;;  %v511_v43 = vmax.f32 %v495_v51, 0.0 }
 0x1da   :  { %v557_v33 = vsel %vm520_vm4, %v512_v12, -inf  ;;  %v1946_v15 = vsel %vm1136_vm11, %v555_v31, %v1898_v34 }
 0x1db   :  { %v1074_v19 = vmax.f32 %v1072_v38, %v1073_v29  ;;  %v765_v61 = vmax.f32 %v763_v39, %v764_v32  ;;  %v1082_v20 = vrot.slane %v1081_v23, 4  ;;  %v556_v13 = vsel %vm140_vm0, %v511_v43, -inf  ;;  %v849_v8 = vpop.permute.xlu1 %848  ;;  %v847_v26 = vpop.permute.xlu0 %846 }
 0x1dc   :  { %v558_v41 = vmax.f32 %v556_v13, %v557_v33  ;;  %v887_v58 = vadd.f32 %v849_v8, %v2115_v49  ;;  %v886_v17 = vadd.f32 %v847_v26, %v2116_v28 }
 0x1dd   :  { %v1075_v16 = vrot.slane %v1074_v19, 2  ;;  %v766_v50 = vrot.slane %v765_v61, 2  ;;  %v1083_v47 = vmax.f32 %v1081_v23, %v1082_v20 }
 0x1de   :  { %v559_v4 = vrot.slane %v558_v41, 4 }
 0x1df   :  { %v1076_v24 = vmax.f32 %v1074_v19, %v1075_v16  ;;  %v767_v56 = vmax.f32 %v765_v61, %v766_v50  ;;  %v1084_v34 = vrot.slane %v1083_v47, 2  ;;  %v652_v22 = vpop.permute.xlu1 %651  ;;  %v650_v40 = vpop.permute.xlu0 %649  ;;  %v580_v61 = vmax.f32 %v578_v25, %v579_v63  ;;  %v2117_v50 = vld [vmem:[#allocation23_spill] sm:$0xff] }
 0x1e0   :  { %v560_v53 = vmax.f32 %v558_v41, %v559_v4  ;;  %v690_v52 = vadd.f32 %v652_v22, %v474_v55  ;;  %v689_v36 = vadd.f32 %v650_v40, %v473_v7  ;;  %v903_v59 = vadd.f32 %v887_v58, %v652_v22  ;;  %v1296_v22 = vld [vmem:[%s2055_s2] ss:$0 sm:$0xff]  ;;  %s1378_s2 = smov [#allocation7]  }
 0x1e1   :  { %v1077_v10 = vrot.slane %v1076_v24, 1  ;;  %v768_v27 = vrot.slane %v767_v56, 1  ;;  %v1085_v21 = vmax.f32 %v1083_v47, %v1084_v34  ;;  %v902_v38 = vadd.f32 %v886_v17, %v650_v40  ;;  %v2118_v47 = vld [vmem:[#allocation21_spill] sm:$0xff]  ;;  %s1195_s17 = sshll.u32 %s1378_s2, 4  ;;  %s1196_s17 = int_to_ptr.vmem [resolvable:$true] %s1195_s17 }
 0x1e2   :  { %v561_v60 = vrot.slane %v560_v53, 2  ;;  %v709_v46 = vadd.f32 %v1783_v5, %v690_v52  ;;  %v708_v9 = vadd.f32 %v1783_v5, %v689_v36  ;;  %v581_v58 = vrot.slane %v580_v61, 1  ;;  %s1341_s18 = scalar_lea.vmem %s1196_s17, 128  ;;  %p1346_p3 = scmp.lt.s32.totalorder %s1196_s17, %s1196_s17 }
 0x1e3   :  { %v1078_v30 = vmax.f32 %v1076_v24, %v1077_v10  ;;  %v769_v57 = vmax.f32 %v767_v56, %v768_v27  ;;  %v1086_v31 = vrot.slane %v1085_v21, 1  ;;  %v970_v39 = vpop.permute.xlu1 %969  ;;  %v968_v51 = vpop.permute.xlu0 %967  ;;  %v791_v24 = vrot.slane %v1835_v45, 4  ;;  %p1342_p2 = scmp.ne.s32.totalorder %s1196_s17, %s1341_s18  ;;  %p1347_p4 = scmp.lt.s32.totalorder %s1341_s18, %s1341_s18 }
 0x1e4   :  { %v562_v1 = vmax.f32 %v560_v53, %v561_v60  ;;  %v725_v55 = vmax.f32 %v709_v46, 0.0  ;;  %v724_v7 = vmax.f32 %v708_v9, 0.0  ;;  %v1008_v14 = vadd.f32 %v970_v39, %v903_v59 }
 0x1e5   :  { %v1007_v12 = vadd.f32 %v968_v51, %v902_v38  ;;  %v1958_v29 = vsel %vm1136_vm11, %v769_v57, %v1915_v18  ;;  %v1087_v32 = vmax.f32 %v1085_v21, %v1086_v31  ;;  %v1174_v23 = vsel %vm1134_vm10, %v1078_v30, %v1921_v42  ;;  %p1348_p5 = por %p1347_p4, %p1346_p3 }
 0x1e6   :  { %v563_v43 = vrot.slane %v562_v1, 1  ;;  %v771_v3 = vsel %vm734_vm5, %v725_v55, -inf  ;;  %v770_v33 = vsel %vm732_vm6, %v724_v7, -inf  ;;  %v1027_v19 = vadd.f32 %v1781_v44, %v1008_v14 }
 0x1e7   :  { %v772_v20 = vmax.f32 %v770_v33, %v771_v3  ;;  %v1026_v13 = vadd.f32 %v1781_v44, %v1007_v12  ;;  %v440_v8 = vpop.permute.xlu1 %439  ;;  %v438_v26 = vpop.permute.xlu0 %437  ;;  %v1967_v18 = vsel %vm1136_vm11, %v1087_v32, %v1174_v23  ;;  %v588_v56 = vrot.slane %v1950_v62, 2  ;;  %p1349_p6 = pnand %p1348_p5, %p1342_p2 }
 0x1e8   :  { %v564_v41 = vmax.f32 %v562_v1, %v563_v43  ;;  %v1043_v16 = vmax.f32 %v1027_v19, 0.0  ;;  %v476_v42 = vadd.f32 %v440_v8, %v2117_v50  ;;  %v475_v4 = vadd.f32 %v438_v26, %v2118_v47  ;;  %v2119_v26 = vld [vmem:[#allocation22_spill] sm:$0xff] }
 0x1e9   :  { %v773_v34 = vrot.slane %v772_v20, 4  ;;  %v1042_v25 = vmax.f32 %v1026_v13, 0.0  ;;  %v1984_v46 = vmax.f32 %v1835_v45, %v791_v24  ;;  %v589_v59 = vmax.f32 %v1950_v62, %v588_v56 }
 0x1ea   :  { %v1089_v63 = vsel %vm1052_vm8, %v1043_v16, -inf  ;;  %v498_v40 = vadd.f32 %v1296_v22, %v476_v42  ;;  %v497_v53 = vadd.f32 %v1296_v22, %v475_v4  ;;  %v1979_v49 = vsel %vm1138_vm12, %v564_v41, %v1946_v15 }
 0x1eb   :  { %v774_v52 = vmax.f32 %v772_v20, %v773_v34  ;;  %v1088_v36 = vsel %vm1050_vm9, %v1042_v25, -inf  ;;  %v853_v10 = vpop.permute.xlu1 %852  ;;  %v656_v27 = vpop.permute.xlu0 %655  ;;  %v793_v12 = vrot.slane %v1984_v46, 2  ;;  %v1994_v43 = vmax.f32 %v580_v61, %v581_v58 }
 0x1ec   :  { %v1090_v21 = vmax.f32 %v1088_v36, %v1089_v63  ;;  %v514_v28 = vmax.f32 %v498_v40, 0.0  ;;  %v513_v17 = vmax.f32 %v497_v53, 0.0  ;;  %v889_v60 = vadd.f32 %v853_v10, %v1697_v37 }
 0x1ed   :  { %v775_v9 = vrot.slane %v774_v52, 2  ;;  %v692_v30 = vadd.f32 %v656_v27, %v476_v42  ;;  %v800_v37 = vrot.slane %v1870_v2, 4  ;;  %v590_v20 = vrot.slane %v589_v59, 1 }
 0x1ee   :  { %v1091_v15 = vrot.slane %v1090_v21, 4  ;;  %v566_v57 = vsel %vm520_vm4, %v514_v28, -inf  ;;  %v565_v31 = vsel %vm140_vm0, %v513_v17, -inf  ;;  %v905_v38 = vadd.f32 %v889_v60, %v656_v27 }
 0x1ef   :  { %v776_v39 = vmax.f32 %v774_v52, %v775_v9  ;;  %v567_v51 = vmax.f32 %v565_v31, %v566_v57  ;;  %v711_v1 = vadd.f32 %v1783_v5, %v692_v30  ;;  %v978_v55 = vpop.permute.xlu1 %977  ;;  %v851_v7 = vpop.permute.xlu0 %850  ;;  %v801_v50 = vmax.f32 %v1870_v2, %v800_v37 }
 0x1f0   :  { %v1092_v45 = vmax.f32 %v1090_v21, %v1091_v15  ;;  %v1010_v14 = vadd.f32 %v1935_v54, %v905_v38  ;;  %v1012_v62 = vadd.f32 %v978_v55, %v1811_v48  ;;  %v888_v41 = vadd.f32 %v851_v7, %v2119_v26 }
 0x1f1   :  { %v777_v32 = vrot.slane %v776_v39, 1  ;;  %v568_v23 = vrot.slane %v567_v51, 4  ;;  %v727_v33 = vmax.f32 %v711_v1, 0.0  ;;  %v591_v53 = vmax.f32 %v589_v59, %v590_v20 }
 0x1f2   :  { %v1093_v3 = vrot.slane %v1092_v45, 2  ;;  %v1031_v19 = vadd.f32 %v1781_v44, %v1012_v62  ;;  %v1029_v8 = vadd.f32 %v1781_v44, %v1010_v14 }
 0x1f3   :  { %v569_v13 = vmax.f32 %v567_v51, %v568_v23  ;;  %v976_v54 = vpop.permute.xlu0 %975  ;;  %v654_v16 = vpop.permute.xlu1 %653  ;;  %v778_v48 = vmax.f32 %v776_v39, %v777_v32  ;;  %v780_v22 = vsel %vm734_vm5, %v727_v33, -inf  ;;  %v802_v51 = vrot.slane %v801_v50, 2 }
 0x1f4   :  { %v1094_v42 = vmax.f32 %v1092_v45, %v1093_v3  ;;  %v1047_v47 = vmax.f32 %v1031_v19, 0.0  ;;  %v1011_v61 = vadd.f32 %v976_v54, %v1823_v35  ;;  %v691_v56 = vadd.f32 %v654_v16, %v475_v4 }
 0x1f5   :  { %v570_v24 = vrot.slane %v569_v13, 2  ;;  %v904_v34 = vadd.f32 %v888_v41, %v654_v16  ;;  %v2003_v25 = vsel %vm1138_vm12, %v778_v48, %v1958_v29  ;;  %v1045_v58 = vmax.f32 %v1029_v8, 0.0 }
 0x1f6   :  { %v1095_v63 = vrot.slane %v1094_v42, 1  ;;  %v1030_v40 = vadd.f32 %v1781_v44, %v1011_v61  ;;  %v710_v52 = vadd.f32 %v1783_v5, %v691_v56  ;;  %v1107_v17 = vsel %vm1052_vm8, %v1047_v47, -inf }
 0x1f7   :  { %v571_v2 = vmax.f32 %v569_v13, %v570_v24  ;;  %v1009_v35 = vadd.f32 %v1937_v0, %v904_v34  ;;  %v980_v36 = vpop.permute.xlu0 %979  ;;  %v982_v4 = vpop.permute.xlu1 %981  ;;  %v1098_v1 = vsel %vm1052_vm8, %v1045_v58, -inf  ;;  %v803_v41 = vmax.f32 %v801_v50, %v802_v51 }
 0x1f8   :  { %v1096_v10 = vmax.f32 %v1094_v42, %v1095_v63  ;;  %v1046_v27 = vmax.f32 %v1030_v40, 0.0  ;;  %v1013_v21 = vadd.f32 %v980_v36, %v1859_v6  ;;  %v1014_v29 = vadd.f32 %v982_v4, %v1844_v11 }
 0x1f9   :  { %v572_v28 = vrot.slane %v571_v2, 1  ;;  %v726_v60 = vmax.f32 %v710_v52, 0.0  ;;  %v1028_v59 = vadd.f32 %v1781_v44, %v1009_v35  ;;  %v804_v24 = vrot.slane %v803_v41, 1 }
 0x1fa   :  { %v1106_v9 = vsel %vm1050_vm9, %v1046_v27, -inf  ;;  %v1032_v5 = vadd.f32 %v1781_v44, %v1013_v21  ;;  %v1033_v0 = vadd.f32 %v1781_v44, %v1014_v29  ;;  %v1176_v30 = vsel %vm1138_vm12, %v1096_v10, %v1967_v18 }
 0x1fb   :  { %v573_v15 = vmax.f32 %v571_v2, %v572_v28  ;;  %v1108_v57 = vmax.f32 %v1106_v9, %v1107_v17  ;;  %v779_v6 = vsel %vm732_vm6, %v726_v60, -inf  ;;  %v1044_v11 = vmax.f32 %v1028_v59, 0.0 }
 0x1fc   :  { %v781_v31 = vmax.f32 %v779_v6, %v780_v22  ;;  %v1048_v38 = vmax.f32 %v1032_v5, 0.0  ;;  %v1049_v39 = vmax.f32 %v1033_v0, 0.0  ;;  %v805_v58 = vmax.f32 %v803_v41, %v804_v24 }
 0x1fd   :  { %v1109_v55 = vrot.slane %v1108_v57, 4  ;;  %v1097_v7 = vsel %vm1050_vm9, %v1044_v11, -inf  ;;  %v1141_v44 = vsel %vm1140_vm13, %v573_v15, %v1979_v49  ;;  %v794_v49 = vmax.f32 %v1984_v46, %v793_v12 }
 0x1fe   :  { %v782_v37 = vrot.slane %v781_v31, 4  ;;  %v1099_v45 = vmax.f32 %v1097_v7, %v1098_v1  ;;  %v1115_v18 = vsel %vm1050_vm9, %v1048_v38, -inf  ;;  %v1116_v14 = vsel %vm1052_vm8, %v1049_v39, -inf }
 0x1ff   :  { %v1110_v62 = vmax.f32 %v1108_v57, %v1109_v55  ;;  %v1117_v32 = vmax.f32 %v1115_v18, %v1116_v14  ;;  %v1143_v23 = vsel %vm1142_vm14, %v1994_v43, %v1141_v44  ;;  %v795_v61 = vrot.slane %v794_v49, 1 }
 0x200   :  { %v783_v3 = vmax.f32 %v781_v31, %v782_v37  ;;  %v1100_v33 = vrot.slane %v1099_v45, 4  ;;  %v1145_v19 = vsel %vm1144_vm15, %v591_v53, %v1143_v23 }
 0x201   :  { %v1111_v20 = vrot.slane %v1110_v62, 2  ;;  %v1118_v13 = vrot.slane %v1117_v32, 4  ;;  %v796_v53 = vmax.f32 %v794_v49, %v795_v61 }
 0x202   :  { %v784_v8 = vrot.slane %v783_v3, 2  ;;  %v1101_v26 = vmax.f32 %v1099_v45, %v1100_v33 }
 0x203   :  { %v1112_v54 = vmax.f32 %v1110_v62, %v1111_v20  ;;  %v1119_v16 = vmax.f32 %v1117_v32, %v1118_v13 }
 0x204   :  { %v785_v48 = vmax.f32 %v783_v3, %v784_v8  ;;  %v1102_v42 = vrot.slane %v1101_v26, 2 }
 0x205   :  { %v1120_v47 = vrot.slane %v1119_v16, 2  ;;  %v1113_v34 = vrot.slane %v1112_v54, 1 }
 0x206   :  { %v786_v43 = vrot.slane %v785_v48, 1  ;;  %v1103_v56 = vmax.f32 %v1101_v26, %v1102_v42 }
 0x207   :  { %v1121_v63 = vmax.f32 %v1119_v16, %v1120_v47  ;;  %v1114_v52 = vmax.f32 %v1112_v54, %v1113_v34 }
 0x208   :  { %v787_v22 = vmax.f32 %v785_v48, %v786_v43  ;;  %v1104_v40 = vrot.slane %v1103_v56, 1 }
 0x209   :  { %v1122_v2 = vrot.slane %v1121_v63, 1 }
 0x20a   :  { %v1159_v46 = vsel %vm1140_vm13, %v787_v22, %v2003_v25  ;;  %v1105_v12 = vmax.f32 %v1103_v56, %v1104_v40 }
 0x20b   :  { %v1160_v50 = vsel %vm1142_vm14, %v796_v53, %v1159_v46  ;;  %v1123_v35 = vmax.f32 %v1121_v63, %v1122_v2 }
 0x20c   :  { %v1161_v36 = vsel %vm1144_vm15, %v805_v58, %v1160_v50  ;;  %v1177_v4 = vsel %vm1140_vm13, %v1105_v12, %v1176_v30 }
 0x20d   :  { %1162 = vrot.lane.b32.xlu0 %v1161_v36, %s1376_s13  ;;  %v1178_v10 = vsel %vm1142_vm14, %v1114_v52, %v1177_v4 }
 0x20e   :  { %v1179_v27 = vsel %vm1144_vm15, %v1123_v35, %v1178_v10 }
 0x20f   :  { %1180 = vrot.lane.b32.xlu1 %v1179_v27, %s1377_s14 }
 0x27f   :  { %v1163_v21 = vpop.permute.xlu0 %1162 }
 0x280   :  { %v1183_v25 = vsel %vm140_vm0, %v1145_v19, %v1163_v21 }
 0x281   :  { %v1181_v29 = vpop.permute.xlu1 %1180 }
 0x282   :  { %v1185_v28 = vsel %vm1184_vm1, %v1183_v25, %v1181_v29 }
 0x283   :  { %v1187_v17 = vsel %vm1186_vm2, %v1185_v28, 0.0 }
 0x284   :  { %1188 = vst [vmem:[#allocation7] sm:$0xff] %v1187_v17 }
 0x285   :  { %1352 = shalt.err (!%p1349_p6)
}
 0x286   :  { %s1353_s21 = scalar_lea.hbm %s2056_s3, 128 }
 0x287   :  { %p1354_p7 = scmp.ne.s32.totalorder %s2056_s3, %s1353_s21  ;;  %p1357_p8 = scmp.lt.u32.totalorder %s1353_s21, %s2056_s3 }
 0x289   :  { %p1359_p9 = pnand %p1357_p8, %p1354_p7 }
 0x28b   :  { %1362 = shalt.err (!%p1359_p9)
}
 0x28c   :  { %1198 = dma.vmem_to_hbm [thread:$0]  %s1196_s17, 128, %s2056_s3, [#allocation4]  }
 0x28d   :  { %1367 = dma.done.wait [#allocation4], 128  }
 0x28e   :  { %1368 = vsyncadd [#allocation4], 4294967168 }
 0x28f   :  { %1202 = vsyncpa [#allocation3], 1 }
 0x290   :  { %1203 = vsyncpa [#allocation6], 1 }
 0x291   :  { %1204 = vsyncpa [#allocation4], 1 }

</bundles_post_ra>
